<compile_context>
chip_gen: v7x
topology: tpu7x:2x2x1
jax: 0.10.0
libtpu: 0.0.40
codegen_flags: <defaults>
</compile_context>

<pallas_src>
import functools

import jax
import jax.numpy as jnp
from jax.experimental import pallas as pl
from jax.experimental.pallas import tpu as pltpu


_LANE = 128
_SUBLANE = 8
_VMEM_SCOPED_DEFAULT = 32 * 1024 * 1024   # scoped default on v5e/v6e/v7x
_VMEM_V7X_PHYSICAL = 64 * 1024 * 1024     # smallest physical VMEM (v7x)


def _round_up(v, m):
    return ((v + m - 1) // m) * m


def _cdiv(a, b):
    return -(-a // b)


def fg_classifier_kernel(x_ref, w_ref, invx_ref, o_ref):
    """One (TM, TN) output tile: out = (x @ wn^T) * inv_x.

    wn rows are pre-normalized (unit L2) in prepare_classifier, so the only
    epilogue work is one (TM, TN) VPU row-scale by the hoisted inv_x. The
    dot_general contracts the last (lane) dim of BOTH operands — MXU-native
    "NT" layout, no transpose — with f32 accumulation.
    """
    raw = jax.lax.dot_general(
        x_ref[...], w_ref[...],
        dimension_numbers=(((1,), (1,)), ((), ())),
        preferred_element_type=jnp.float32)                       # (TM, TN) f32
    # NOTE: scale-after-matmul (raw values up to ||x||) can lose f32 precision
    # if un-normalized feature magnitudes are extreme; fine for BN'd features.
    o_ref[...] = (raw * invx_ref[...]).astype(o_ref.dtype)


def prepare_classifier(weight, *, stream_dtype=jnp.bfloat16):
    """One-time (per parameter update) classifier-weight preparation.

    Fully pre-normalizes the weight rows (folding inv_w into the weight so it
    never needs to be streamed or re-applied per tile), pads the class dim to
    a lane multiple (128) for unmasked stores / full MXU N width, and casts to
    the streaming dtype (bf16 by default: halves weight HBM traffic and uses
    the fast MXU path on v6e/v7x). Call once and reuse across forward calls —
    do NOT put this in the per-call path.
    """
    C, D = weight.shape
    w32 = weight.astype(jnp.float32)
    # 1 / max(||w||, eps) == rsqrt(max(sum(w^2), eps^2)); eps = 1e-12
    inv_w = jax.lax.rsqrt(
        jnp.maximum(jnp.sum(w32 * w32, axis=1, keepdims=True),
                    jnp.float32(1e-24)))
    wn = w32 * inv_w                                   # unit-L2 rows
    C_pad = _round_up(C, _LANE)
    wn = jnp.pad(wn, ((0, C_pad - C), (0, 0)))         # zero rows stay zero
    return wn.astype(stream_dtype)


@functools.partial(jax.jit, static_argnames=("num_classes", "tm", "tn"))
def fg_classifier(x, w_prepared, *, num_classes, tm=512, tn=256):
    """x: (B, D) float; w_prepared: output of prepare_classifier.

    Returns (B, num_classes) cosine logits in x.dtype.
    """
    B, D = x.shape
    C_pad, D_w = w_prepared.shape
    assert D == D_w and C_pad % _LANE == 0
    C = num_classes
    assert 0 < C <= C_pad

    # ---- adaptive batch tiling: multiple of 8 close to ceil(B / n_tiles) so
    # off-size batches (e.g. B=300) don't burn ~40% of MXU/DMA on zero rows.
    n_i = max(1, _cdiv(B, tm))
    TM = _round_up(_cdiv(B, n_i), _SUBLANE)
    B_pad = TM * n_i

    # ---- column tiling: largest multiple of 128 <= tn that divides C_pad.
    TN = _LANE
    for cand in range(_LANE, min(tn, C_pad) + 1, _LANE):
        if C_pad % cand == 0:
            TN = cand
    # v7x megacore: if there is only one batch tile, make sure there are at
    # least two column tiles so both TensorCores get work.
    if n_i == 1 and C_pad // TN < 2 and C_pad >= 2 * _LANE:
        TN = _LANE
        for cand in range(_LANE, C_pad // 2 + 1, _LANE):
            if C_pad % cand == 0:
                TN = cand

    grid = (n_i, C_pad // TN)

    # ---- hoisted per-row inverse L2 norm (f32), computed ONCE per batch in
    # the wrapper instead of once per column tile inside the kernel.
    x32 = x.astype(jnp.float32)
    inv_x = jax.lax.rsqrt(
        jnp.maximum(jnp.sum(x32 * x32, axis=1, keepdims=True),
                    jnp.float32(1e-24)))                           # (B, 1)
    inv_x = jnp.pad(inv_x, ((0, B_pad - B), (0, 0)))               # (B_pad, 1)

    # MXU operands in the streaming dtype (bf16 by default); padded rows have
    # inv_x == 0 and dot == 0, so padding stays exactly zero.
    x_p = jnp.pad(x, ((0, B_pad - B), (0, 0))).astype(w_prepared.dtype)

    # ---- VMEM budget (v7x: 64 MiB physical, 32 MiB scoped default).
    op_bytes = jnp.dtype(w_prepared.dtype).itemsize
    out_bytes = jnp.dtype(x.dtype).itemsize
    vmem_est = (2 * (TM * D + TN * D) * op_bytes      # double-buffered inputs
                + 2 * TM * 4                          # inv_x (f32)
                + 2 * TM * TN * out_bytes)            # output tile
    cp_kwargs = dict(dimension_semantics=("parallel", "parallel"))
    vmem_needed = int(1.25 * vmem_est)
    if vmem_needed > _VMEM_SCOPED_DEFAULT:
        cp_kwargs["vmem_limit_bytes"] = min(vmem_needed, _VMEM_V7X_PHYSICAL)

    out = pl.pallas_call(
        fg_classifier_kernel,
        out_shape=jax.ShapeDtypeStruct((B_pad, C_pad), x.dtype),
        grid=grid,
        in_specs=[
            pl.BlockSpec((TM, D), lambda i, j: (i, 0)),   # x tile (D resident)
            pl.BlockSpec((TN, D), lambda i, j: (j, 0)),   # pre-normalized weight
            pl.BlockSpec((TM, 1), lambda i, j: (i, 0)),   # hoisted inv_x
        ],
        out_specs=pl.BlockSpec((TM, TN), lambda i, j: (i, j)),
        compiler_params=pltpu.CompilerParams(**cp_kwargs),
    )(x_p, w_prepared, inv_x)

    return out[:B, :C]


def fg_classifier_ref(x, weight):
    eps = 1e-12
    xn = x / jnp.maximum(jnp.linalg.norm(x, axis=1, keepdims=True), eps)
    wn = weight / jnp.maximum(jnp.linalg.norm(weight, axis=1, keepdims=True), eps)
    return xn @ wn.T


if __name__ == "__main__":
    key = jax.random.PRNGKey(0)
    k1, k2, k3, k4 = jax.random.split(key, 4)

    # --- Case 1: tiny inference-like head, single tile ---
    B, D, C = 8, 32, 16
    x = jax.random.normal(k1, (B, D), dtype=jnp.float32)
    init_center = jax.random.normal(k2, (C, D), dtype=jnp.float32)

    w_prep = prepare_classifier(init_center)            # one-time prep (bf16)
    out = fg_classifier(x, w_prep, num_classes=C)
    out = jax.block_until_ready(out)
    ref = fg_classifier_ref(x, init_center)
    assert out.shape == (B, C)
    # bf16 operand stream (f32 accumulation): cosine logits agree with the f32
    # reference to ~1e-2.
    assert jnp.allclose(out, ref, atol=2e-2, rtol=2e-2), float(
        jnp.max(jnp.abs(out - ref)))

    # --- Case 2: multi-tile grid (adaptive TM, several column tiles) ---
    B2, D2, C2 = 40, 64, 384
    x2 = jax.random.normal(k3, (B2, D2), dtype=jnp.float32)
    w2 = jax.random.normal(k4, (C2, D2), dtype=jnp.float32)

    w2_prep = prepare_classifier(w2)
    out2 = fg_classifier(x2, w2_prep, num_classes=C2, tm=16, tn=128)
    out2 = jax.block_until_ready(out2)
    ref2 = fg_classifier_ref(x2, w2)
    assert out2.shape == (B2, C2)
    assert jnp.allclose(out2, ref2, atol=2e-2, rtol=2e-2), float(
        jnp.max(jnp.abs(out2 - ref2)))

    print("KERNEL_OK")
</pallas_src>

<mosaic_0001>
module attributes {stable_mosaic.version = 11 : i64} {
  func.func @fg_classifier_kernel(%arg0: i32, %arg1: i32, %arg2: memref<8x32xbf16, #tpu.memory_space<vmem>>, %arg3: memref<128x32xbf16, #tpu.memory_space<vmem>>, %arg4: memref<8x1xf32, #tpu.memory_space<vmem>>, %arg5: memref<8x128xf32, #tpu.memory_space<vmem>>) attributes {dimension_semantics = [#tpu.dimension_semantics<parallel>, #tpu.dimension_semantics<parallel>], iteration_bounds = array<i64: 1, 1>, scalar_prefetch = 0 : i64, scratch_operands = 0 : i64, tpu.core_type = #tpu.core_type<tc>, window_params = [{transform_indices = @transform_0, window_bounds = array<i64: 8, 32>}, {transform_indices = @transform_1, window_bounds = array<i64: 128, 32>}, {transform_indices = @transform_2, window_bounds = array<i64: 8, 1>}, {transform_indices = @transform_3, window_bounds = array<i64: 8, 128>}]} {
    %c0 = arith.constant 0 : index
    %c0_0 = arith.constant 0 : index
    %0 = vector.load %arg2[%c0, %c0_0] : memref<8x32xbf16, #tpu.memory_space<vmem>>, vector<8x32xbf16>
    %c0_1 = arith.constant 0 : index
    %c0_2 = arith.constant 0 : index
    %1 = vector.load %arg3[%c0_1, %c0_2] : memref<128x32xbf16, #tpu.memory_space<vmem>>, vector<128x32xbf16>
    %cst = arith.constant dense<0.000000e+00> : vector<8x128xf32>
    %2 = tpu.matmul %0, %1, %cst {dimension_numbers = #tpu.dot_dimension_numbers<[1], [1], [0], [0], [0, 0, 1, 0], [], []>} : vector<8x32xbf16>, vector<128x32xbf16>, vector<8x128xf32> -> vector<8x128xf32>
    %c0_3 = arith.constant 0 : index
    %c0_4 = arith.constant 0 : index
    %3 = vector.load %arg4[%c0_3, %c0_4] : memref<8x1xf32, #tpu.memory_space<vmem>>, vector<8x1xf32>
    %4 = vector.broadcast %3 : vector<8x1xf32> to vector<8x128xf32>
    %5 = arith.mulf %2, %4 : vector<8x128xf32>
    %c0_5 = arith.constant 0 : index
    %c0_6 = arith.constant 0 : index
    %6 = vector.load %arg5[%c0_5, %c0_6] : memref<8x128xf32, #tpu.memory_space<vmem>>, vector<8x128xf32>
    tpu.vector_store %arg5[%c0_5, %c0_6], %5 {strides = array<i32>} : memref<8x128xf32, #tpu.memory_space<vmem>>, vector<8x128xf32>,
    return
  }
  func.func @transform_0(%arg0: i32, %arg1: i32) -> (i32, i32) {
    %c0_i32 = arith.constant 0 : i32
    %c0_i32_0 = arith.constant 0 : i32
    return %arg0, %c0_i32 : i32, i32
  }
  func.func @transform_1(%arg0: i32, %arg1: i32) -> (i32, i32) {
    %c0_i32 = arith.constant 0 : i32
    %c0_i32_0 = arith.constant 0 : i32
    return %arg1, %c0_i32 : i32, i32
  }
  func.func @transform_2(%arg0: i32, %arg1: i32) -> (i32, i32) {
    %c0_i32 = arith.constant 0 : i32
    %c0_i32_0 = arith.constant 0 : i32
    return %arg0, %c0_i32 : i32, i32
  }
  func.func @transform_3(%arg0: i32, %arg1: i32) -> (i32, i32) {
    %c0_i32 = arith.constant 0 : i32
    return %arg0, %arg1 : i32, i32
  }
}

</mosaic_0001>

<bundles_post_ra>
// kernel: fg_classifier.1
= control target key start
LH: loop header
LB: loop body
LE: loop exit
PB: predicated region body
PF: predicated region fallthrough
CT: control target
= control target key end

     0   :  { %v238_v1 = vmov 0.0   ;;  %vm73_vm0 = vcmask 261120   ;;  %vm239_vm1 = vmmov 0   ;;  %v240_v6 = vmov 0   ;;  %s313_s0 = inlined_call_operand.vmem [shape: bf16[8,32], index: 0, kind: input, shape index: {}]   ;;  %s314_s1 = inlined_call_operand.vmem [shape: bf16[128,32], index: 1, kind: input, shape index: {}]   ;;  %s315_s2 = inlined_call_operand.vmem [shape: f32[8,1], index: 2, kind: input, shape index: {}]   ;;  %s316_s3 = inlined_call_operand.hbm [shape: f32[8,128], index: 3, kind: output, shape index: {}]  }
   0x1   :  { %v206_v0 = vld [vmem:[%s314_s1] sm:$0xff]   ;;  %181 = vmatprep.subr.bf16.mxu0 %v238_v1  ;;  %v207_v3 = vld [vmem:[%s314_s1 + $0x8] sm:$0xff]   ;;  %197 = vmatprep.mubr.msk.bf16.mxu0 %vm239_vm1, %v238_v1 }
   0x2   :  { %v78_v2 = vsel %vm73_vm0, %v206_v0, 0  ;;  %v81_v4 = vsel %vm73_vm0, %v207_v3, 0  ;;  %v141_v5 = vld [vmem:[%s315_s2] sm:$0xff]  ;;  %205 = vset.pattern.permute.xlu0 %v240_v6 }
   0x3   :  { %182 = vmatpush3.bf16.xpose.msra.mxu0 %v78_v2 }
   0x4   :  { %183 = vmatprep.subr.bf16.mxu0 %v238_v1 }
   0x5   :  { %8 = vsyncpa [#allocation3], 0  ;;  %144 = vperm.xlu0 %205, %v141_v5   ;;  %v208_v7 = vld [vmem:[%s314_s1 + $0x10] sm:$0xff]   ;;  %v209_v9 = vld [vmem:[%s314_s1 + $0x18] sm:$0xff]   ;;  %s241_s4 = smov [#allocation2]  }
   0x6   :  { %v84_v8 = vsel %vm73_vm0, %v208_v7, 0  ;;  %v87_v10 = vsel %vm73_vm0, %v209_v9, 0  ;;  %v210_v11 = vld [vmem:[%s314_s1 + $0x20] sm:$0xff]   ;;  %v211_v13 = vld [vmem:[%s314_s1 + $0x28] sm:$0xff]   ;;  %v212_v15 = vld [vmem:[%s314_s1 + $0x30] sm:$0xff]   ;;  %s155_s5 = sshll.u32 %s241_s4, 4  ;;  %s156_s5 = int_to_ptr.vmem [resolvable:$true] %s155_s5 }
   0x7   :  { %v90_v12 = vsel %vm73_vm0, %v210_v11, 0  ;;  %v93_v14 = vsel %vm73_vm0, %v211_v13, 0  ;;  %v96_v16 = vsel %vm73_vm0, %v212_v15, 0  ;;  %v213_v17 = vld [vmem:[%s314_s1 + $0x38] sm:$0xff]   ;;  %v16_v19 = vld [vmem:[%s313_s0] sm:$0xf]  ;;  %p219_p1 = scmp.lt.s32.totalorder %s156_s5, %s156_s5 }
   0x8   :  { %v99_v18 = vsel %vm73_vm0, %v213_v17, 0  ;;  %s214_s1 = scalar_lea.vmem %s156_s5, 128 }
   0x9   :  { %p215_p0 = scmp.ne.s32.totalorder %s156_s5, %s214_s1  ;;  %p220_p2 = scmp.lt.s32.totalorder %s214_s1, %s214_s1 }
   0xb   :  { %184 = vmatpush3.bf16.xpose.msra.mxu0 %v81_v4  ;;  %p221_p3 = por %p220_p2, %p219_p1 }
   0xc   :  { %185 = vmatprep.subr.bf16.mxu0 %v238_v1 }
   0xd   :  { %p222_p4 = pnand %p221_p3, %p215_p0 }
  0x13   :  { %186 = vmatpush3.bf16.xpose.msra.mxu0 %v84_v8 }
  0x14   :  { %187 = vmatprep.subr.bf16.mxu0 %v238_v1 }
  0x1b   :  { %188 = vmatpush3.bf16.xpose.msra.mxu0 %v87_v10 }
  0x1c   :  { %189 = vmatprep.subr.bf16.mxu0 %v238_v1 }
  0x23   :  { %190 = vmatpush3.bf16.xpose.msra.mxu0 %v90_v12 }
  0x24   :  { %191 = vmatprep.subr.bf16.mxu0 %v238_v1 }
  0x2b   :  { %192 = vmatpush3.bf16.xpose.msra.mxu0 %v93_v14 }
  0x2c   :  { %193 = vmatprep.subr.bf16.mxu0 %v238_v1 }
  0x33   :  { %194 = vmatpush3.bf16.xpose.msra.mxu0 %v96_v16 }
  0x34   :  { %195 = vmatprep.subr.bf16.mxu0 %v238_v1 }
  0x3b   :  { %196 = vmatpush3.bf16.xpose.msra.mxu0 %v99_v18 }
  0x42   :  { %198 = vmatmul.mubr.msk.bf16.vlgmr.msra.gmra.mrb[0].mxu0 %vm73_vm0, %v16_v19 }
  0x84   :  { %v145_v20 = vpop.permute.xlu0 %144 }
 0x115   :  { %v135_v21 = vpop.f32.mrb[0].mxu0 }
 0x116   :  { %v147_v22 = vmul.f32 %v145_v20, %v135_v21  ;;  %v199_v23 = vpop.f32.mrb[1].mxu0 }
 0x117   :  { %v138_v24 = vpop.f32.mrb[2].mxu0 }
 0x118   :  { %148 = vst [vmem:[#allocation2] sm:$0xff] %v147_v22  ;;  %v200_v25 = vpop.f32.mrb[3].mxu0 }
 0x119   :  { %225 = shalt.err (!%p222_p4)
}
 0x11a   :  { %s226_s7 = scalar_lea.hbm %s316_s3, 128 }
 0x11b   :  { %p227_p5 = scmp.ne.s32.totalorder %s316_s3, %s226_s7  ;;  %p230_p6 = scmp.lt.u32.totalorder %s226_s7, %s316_s3 }
 0x11d   :  { %p232_p7 = pnand %p230_p6, %p227_p5 }
 0x11f   :  { %235 = shalt.err (!%p232_p7)
}
 0x120   :  { %158 = dma.vmem_to_hbm [thread:$0]  %s156_s5, 128, %s316_s3, [#allocation3]  }
 0x121   :  { %236 = dma.done.wait [#allocation3], 128  }
 0x122   :  { %237 = vsyncadd [#allocation3], 4294967168 }
 0x123   :  { %162 = vsyncpa [#allocation3], 1 }

</bundles_post_ra>
